<compile_context>
chip_gen: v7x
topology: tpu7x:2x2x1
jax: 0.10.0
libtpu: 0.0.40
codegen_flags: <defaults>
</compile_context>

<pallas_src>
import functools
from math import gcd

import numpy as np
import jax
import jax.numpy as jnp
from jax import lax
from jax.experimental import pallas as pl
from jax.experimental.pallas import tpu as pltpu

HIGHEST = lax.Precision.HIGHEST


def lcm(*numbers):
    return int(functools.reduce(lambda x, y: int(x * y / gcd(x, y)), numbers, 1))


def _softmax_last(x):
    m = jnp.max(x, axis=-1, keepdims=True)
    e = jnp.exp(x - m)
    return e * pl.reciprocal(jnp.sum(e, axis=-1, keepdims=True), approx=True)


# ----------------------------- Pallas kernel --------------------------------
def _make_gbst_kernel(blocks):
    nb = len(blocks)
    # position of each bs>1 block's (pool, expand) matrix pair among the
    # trailing refs
    mat_pos = {}
    p = 0
    for k, (bs, _) in enumerate(blocks):
        if bs > 1:
            mat_pos[k] = p
            p += 2
    n_mats = p

    def kernel(x_ref, wdw_ref, bdw_ref, wpw_ref, bpw_ref, wsc_ref, bsc_ref,
               dsm_ref, *rest):
        mats = rest[:n_mats]
        o_ref = rest[n_mats]

        Bt = x_ref.shape[0]
        d = x_ref.shape[2]
        K = wdw_ref.shape[0]
        n = x_ref.shape[1] - (K - 1)

        # ---- pos_conv: depthwise conv (input pre-padded with K-1 zeros) -----
        conv = x_ref[:, 0:n, :] * wdw_ref[0]
        for k in range(1, K):
            conv = conv + x_ref[:, k:k + n, :] * wdw_ref[k]
        conv = conv + bdw_ref[0]

        # ---- pos_conv: 1x1 projection, all Bt*n rows in one MXU matmul ------
        y_flat = (jnp.dot(conv.reshape(Bt * n, d), wpw_ref[...],
                          preferred_element_type=jnp.float32) + bpw_ref[0])

        # ---- score projection, also one MXU matmul for all Bt*n rows --------
        yw_flat = jnp.dot(y_flat, wsc_ref[...],
                          preferred_element_type=jnp.float32)       # (Bt*n, 1)

        lane = lax.broadcasted_iota(jnp.int32, (n, nb), 1)           # hoisted

        for bt in range(Bt):
            y = y_flat[bt * n:(bt + 1) * n, :]                       # (n, d)
            yw = yw_flat[bt * n:(bt + 1) * n, :]                     # (n, 1)

            # ---- scores via linearity: pool / expand yw per block size ------
            scores = jnp.zeros((n, nb), jnp.float32)
            for k, (bs, _) in enumerate(blocks):
                if bs == 1:
                    col = yw
                else:
                    pool = mats[mat_pos[k]]                          # (m_k, n)
                    expd = mats[mat_pos[k] + 1]                      # (n, m_k)
                    pooled = jnp.dot(pool[...], yw,
                                     preferred_element_type=jnp.float32)
                    pooled = pooled * (1.0 / bs)
                    col = jnp.dot(expd[...], pooled,
                                  preferred_element_type=jnp.float32)
                scores = scores + jnp.where(lane == k, col, 0.0)
            scores = scores + bsc_ref[0, 0]
            probs = _softmax_last(scores)                            # (n, nb)

            # ---- score consensus attention ----------------------------------
            sim = lax.dot_general(probs, probs, (((1,), (1,)), ((), ())),
                                  preferred_element_type=jnp.float32)  # (n, n)
            attn = _softmax_last(sim)
            probs = jnp.dot(attn, probs,
                            preferred_element_type=jnp.float32)      # (n, nb)

            # ---- weighted sum of block representations -----------------------
            # only one expanded (n, d) rep is live at a time
            out = jnp.zeros((n, d), jnp.float32)
            for k, (bs, _) in enumerate(blocks):
                w_col = probs[:, k:k + 1]                            # (n, 1)
                if bs == 1:
                    out = out + y * w_col
                else:
                    pool = mats[mat_pos[k]]
                    expd = mats[mat_pos[k] + 1]
                    rep_small = jnp.dot(pool[...], y,
                                        preferred_element_type=jnp.float32)
                    rep_small = rep_small * (1.0 / bs)               # (m_k, d)
                    rep = jnp.dot(expd[...], rep_small,
                                  preferred_element_type=jnp.float32)  # (n, d)
                    out = out + rep * w_col

            # ---- downsample: mean over consecutive ds positions --------------
            o_ref[bt] = jnp.dot(dsm_ref[...], out,
                                preferred_element_type=jnp.float32)

    return kernel, n_mats


# ----------------------------- wrapper ---------------------------------------
def gbst_pallas(tokens, emb, wdw, bdw, wpw, bpw, wsc, bsc, blocks, ds,
                batch_tile=None):
    # glue: embedding gather + conv padding in plain JAX
    x = emb[tokens].astype(jnp.float32)                       # (B, n, d)
    B, n, d = x.shape
    K = max(bs for bs, _ in blocks)
    block_mult = lcm(*[bs for bs, _ in blocks])
    assert n % block_mult == 0 and n % ds == 0
    n_ds = n // ds

    if batch_tile is None:
        # keep >=2 grid steps (two v7x TCs) while fattening each step when B
        # is large enough.
        batch_tile = B // 2 if (B % 2 == 0 and B >= 4) else 1
    assert B % batch_tile == 0
    Bt = batch_tile

    n_pad = n + K - 1
    x_pad = jnp.pad(x, ((0, 0), (0, K - 1), (0, 0)))          # (B, n+K-1, d)

    idx = jnp.arange(n)
    # small membership (pool / expand) matrices, one pair per block size > 1
    pool_mats = []
    pool_specs = []
    for bs, off in blocks:
        if bs == 1:
            continue
        if off > 0:
            left = bs - off
            m_k = n // bs + 1
            blk_id = (idx + left) // bs
        else:
            m_k = n // bs
            blk_id = idx // bs
        R = (blk_id[None, :] == jnp.arange(m_k)[:, None]).astype(jnp.float32)
        pool_mats += [R, R.T]                                  # (m_k,n), (n,m_k)
        pool_specs += [pl.BlockSpec((m_k, n), lambda b: (0, 0)),
                       pl.BlockSpec((n, m_k), lambda b: (0, 0))]
    # downsample mean matrix (n/ds, n)
    dsm = ((idx[None, :] // ds) == jnp.arange(n_ds)[:, None]).astype(
        jnp.float32) / ds

    kernel, n_mats = _make_gbst_kernel(blocks)
    assert n_mats == len(pool_mats)

    out = pl.pallas_call(
        kernel,
        out_shape=jax.ShapeDtypeStruct((B, n_ds, d), jnp.float32),
        grid=(B // Bt,),
        in_specs=[
            pl.BlockSpec((Bt, n_pad, d), lambda b: (b, 0, 0)),  # padded embeds
            pl.BlockSpec((K, d), lambda b: (0, 0)),             # depthwise taps
            pl.BlockSpec((1, d), lambda b: (0, 0)),             # depthwise bias
            pl.BlockSpec((d, d), lambda b: (0, 0)),             # pointwise W^T
            pl.BlockSpec((1, d), lambda b: (0, 0)),             # pointwise bias
            pl.BlockSpec((d, 1), lambda b: (0, 0)),             # score weight
            pl.BlockSpec((1, 1), lambda b: (0, 0)),             # score bias
            pl.BlockSpec((n_ds, n), lambda b: (0, 0)),          # downsample mean
        ] + pool_specs,
        out_specs=pl.BlockSpec((Bt, n_ds, d), lambda b: (b, 0, 0)),
        compiler_params=pltpu.CompilerParams(
            dimension_semantics=("parallel",)),
    )(x_pad, wdw, bdw, wpw, bpw, wsc, bsc, dsm, *pool_mats)
    return out


# ----------------------------- pure-JAX reference ----------------------------
def gbst_reference(tokens, emb, wdw, bdw, wpw, bpw, wsc, bsc, blocks, ds):
    x = emb[tokens].astype(jnp.float32)
    B, n, d = x.shape
    K = max(bs for bs, _ in blocks)
    xp = jnp.pad(x, ((0, 0), (0, K - 1), (0, 0)))
    conv = jnp.zeros((B, n, d), jnp.float32)
    for k in range(K):
        conv = conv + xp[:, k:k + n, :] * wdw[k]
    conv = conv + bdw[0]
    y = jnp.einsum('bnd,de->bne', conv, wpw, precision=HIGHEST) + bpw[0]
    reprs = []
    for bs, _ in blocks:
        r = y.reshape(B, n // bs, bs, d).mean(axis=2)
        reprs.append(jnp.repeat(r, bs, axis=1))
    block_reprs = jnp.stack(reprs, axis=2)                    # (B, n, nb, d)
    scores = jnp.einsum('bnkd,de->bnke', block_reprs, wsc,
                        precision=HIGHEST)[..., 0] + bsc[0, 0]
    scores = jax.nn.softmax(scores, axis=2)
    sim = jnp.einsum('bik,bjk->bij', scores, scores, precision=HIGHEST)
    attn = jax.nn.softmax(sim, axis=-1)
    scores = jnp.einsum('bij,bjk->bik', attn, scores, precision=HIGHEST)
    out = (block_reprs * scores[..., None]).sum(axis=2)
    out = out.reshape(B, n // ds, ds, d).mean(axis=2)
    return out


# ----------------------------- main -------------------------------------------
if __name__ == "__main__":
    key = jax.random.PRNGKey(0)
    num_tokens, dim = 32, 32
    max_block_size, ds_factor = 4, 4
    blocks = tuple((bs, 0) for bs in range(1, max_block_size + 1))   # (1,2,3,4)
    B, n = 2, 24   # 24 divisible by lcm(1,2,3,4)=12 and by ds_factor=4

    ks = jax.random.split(key, 8)
    tokens = jax.random.randint(ks[0], (B, n), 0, num_tokens, dtype=jnp.int32)
    emb = 0.1 * jax.random.normal(ks[1], (num_tokens, dim), jnp.float32)
    # nn.Conv1d(dim, dim, K, groups=dim): weight (dim, 1, K) -> stored as (K, dim)
    wdw = 0.2 * jax.random.normal(ks[2], (max_block_size, dim), jnp.float32)
    bdw = 0.05 * jax.random.normal(ks[3], (1, dim), jnp.float32)
    # nn.Conv1d(dim, dim, 1): weight (dim, dim, 1) -> stored transposed (d_in, d_out)
    wpw = 0.15 * jax.random.normal(ks[4], (dim, dim), jnp.float32)
    bpw = 0.05 * jax.random.normal(ks[5], (1, dim), jnp.float32)
    # nn.Linear(dim, 1): weight (1, dim) -> stored transposed (dim, 1)
    wsc = 0.3 * jax.random.normal(ks[6], (dim, 1), jnp.float32)
    bsc = 0.05 * jax.random.normal(ks[7], (1, 1), jnp.float32)

    out = gbst_pallas(tokens, emb, wdw, bdw, wpw, bpw, wsc, bsc, blocks,
                      ds_factor)
    out = jax.block_until_ready(out)

    ref = gbst_reference(tokens, emb, wdw, bdw, wpw, bpw, wsc, bsc, blocks,
                         ds_factor)
    # tolerance loosened: kernel runs single-pass MXU (bf16 mul / f32 acc) and
    # approx-reciprocal softmax; reference is full-f32 HIGHEST.
    np.testing.assert_allclose(np.asarray(out), np.asarray(ref),
                               rtol=5e-2, atol=5e-3)

    assert out.shape == (B, n // ds_factor, dim)
    print("KERNEL_OK")
</pallas_src>

<mosaic_0001>
module attributes {stable_mosaic.version = 11 : i64} {
  func.func @kernel(%arg0: i32, %arg1: memref<1x27x32xf32, #tpu.memory_space<vmem>>, %arg2: memref<4x32xf32, #tpu.memory_space<vmem>>, %arg3: memref<1x32xf32, #tpu.memory_space<vmem>>, %arg4: memref<32x32xf32, #tpu.memory_space<vmem>>, %arg5: memref<1x32xf32, #tpu.memory_space<vmem>>, %arg6: memref<32x1xf32, #tpu.memory_space<vmem>>, %arg7: memref<1x1xf32, #tpu.memory_space<vmem>>, %arg8: memref<6x24xf32, #tpu.memory_space<vmem>>, %arg9: memref<12x24xf32, #tpu.memory_space<vmem>>, %arg10: memref<24x12xf32, #tpu.memory_space<vmem>>, %arg11: memref<8x24xf32, #tpu.memory_space<vmem>>, %arg12: memref<24x8xf32, #tpu.memory_space<vmem>>, %arg13: memref<6x24xf32, #tpu.memory_space<vmem>>, %arg14: memref<24x6xf32, #tpu.memory_space<vmem>>, %arg15: memref<1x6x32xf32, #tpu.memory_space<vmem>>) attributes {dimension_semantics = [#tpu.dimension_semantics<parallel>], iteration_bounds = array<i64: 2>, scalar_prefetch = 0 : i64, scratch_operands = 0 : i64, tpu.core_type = #tpu.core_type<tc>, window_params = [{transform_indices = @transform_0, window_bounds = array<i64: 1, 27, 32>}, {pipeline_mode = #tpu.pipeline_mode<synchronous>, transform_indices = @transform_1, window_bounds = array<i64: 4, 32>}, {pipeline_mode = #tpu.pipeline_mode<synchronous>, transform_indices = @transform_2, window_bounds = array<i64: 1, 32>}, {pipeline_mode = #tpu.pipeline_mode<synchronous>, transform_indices = @transform_3, window_bounds = array<i64: 32, 32>}, {pipeline_mode = #tpu.pipeline_mode<synchronous>, transform_indices = @transform_4, window_bounds = array<i64: 1, 32>}, {pipeline_mode = #tpu.pipeline_mode<synchronous>, transform_indices = @transform_5, window_bounds = array<i64: 32, 1>}, {pipeline_mode = #tpu.pipeline_mode<synchronous>, transform_indices = @transform_6, window_bounds = array<i64: 1, 1>}, {pipeline_mode = #tpu.pipeline_mode<synchronous>, transform_indices = @transform_7, window_bounds = array<i64: 6, 24>}, {pipeline_mode = #tpu.pipeline_mode<synchronous>, transform_indices = @transform_8, window_bounds = array<i64: 12, 24>}, {pipeline_mode = #tpu.pipeline_mode<synchronous>, transform_indices = @transform_9, window_bounds = array<i64: 24, 12>}, {pipeline_mode = #tpu.pipeline_mode<synchronous>, transform_indices = @transform_10, window_bounds = array<i64: 8, 24>}, {pipeline_mode = #tpu.pipeline_mode<synchronous>, transform_indices = @transform_11, window_bounds = array<i64: 24, 8>}, {pipeline_mode = #tpu.pipeline_mode<synchronous>, transform_indices = @transform_12, window_bounds = array<i64: 6, 24>}, {pipeline_mode = #tpu.pipeline_mode<synchronous>, transform_indices = @transform_13, window_bounds = array<i64: 24, 6>}, {transform_indices = @transform_14, window_bounds = array<i64: 1, 6, 32>}]} {
    %c0 = arith.constant 0 : index
    %c0_0 = arith.constant 0 : index
    %c0_1 = arith.constant 0 : index
    %0 = vector.load %arg1[%c0, %c0_0, %c0_1] : memref<1x27x32xf32, #tpu.memory_space<vmem>>, vector<1x24x32xf32>
    %c0_2 = arith.constant 0 : index
    %c0_3 = arith.constant 0 : index
    %1 = vector.load %arg2[%c0_2, %c0_3] : memref<4x32xf32, #tpu.memory_space<vmem>>, vector<1x32xf32>
    %2 = vector.shape_cast %1 : vector<1x32xf32> to vector<32xf32>
    %3 = vector.shape_cast %2 : vector<32xf32> to vector<1x1x32xf32>
    %4 = vector.broadcast %3 : vector<1x1x32xf32> to vector<1x24x32xf32>
    %5 = arith.mulf %0, %4 : vector<1x24x32xf32>
    %c0_4 = arith.constant 0 : index
    %c1 = arith.constant 1 : index
    %c0_5 = arith.constant 0 : index
    %6 = vector.load %arg1[%c0_4, %c1, %c0_5] : memref<1x27x32xf32, #tpu.memory_space<vmem>>, vector<1x24x32xf32>
    %c1_6 = arith.constant 1 : index
    %c0_7 = arith.constant 0 : index
    %7 = vector.load %arg2[%c1_6, %c0_7] : memref<4x32xf32, #tpu.memory_space<vmem>>, vector<1x32xf32>
    %8 = vector.shape_cast %7 : vector<1x32xf32> to vector<32xf32>
    %9 = vector.shape_cast %8 : vector<32xf32> to vector<1x1x32xf32>
    %10 = vector.broadcast %9 : vector<1x1x32xf32> to vector<1x24x32xf32>
    %11 = arith.mulf %6, %10 : vector<1x24x32xf32>
    %12 = arith.addf %5, %11 : vector<1x24x32xf32>
    %c0_8 = arith.constant 0 : index
    %c2 = arith.constant 2 : index
    %c0_9 = arith.constant 0 : index
    %13 = vector.load %arg1[%c0_8, %c2, %c0_9] : memref<1x27x32xf32, #tpu.memory_space<vmem>>, vector<1x24x32xf32>
    %c2_10 = arith.constant 2 : index
    %c0_11 = arith.constant 0 : index
    %14 = vector.load %arg2[%c2_10, %c0_11] : memref<4x32xf32, #tpu.memory_space<vmem>>, vector<1x32xf32>
    %15 = vector.shape_cast %14 : vector<1x32xf32> to vector<32xf32>
    %16 = vector.shape_cast %15 : vector<32xf32> to vector<1x1x32xf32>
    %17 = vector.broadcast %16 : vector<1x1x32xf32> to vector<1x24x32xf32>
    %18 = arith.mulf %13, %17 : vector<1x24x32xf32>
    %19 = arith.addf %12, %18 : vector<1x24x32xf32>
    %c0_12 = arith.constant 0 : index
    %c3 = arith.constant 3 : index
    %c0_13 = arith.constant 0 : index
    %20 = vector.load %arg1[%c0_12, %c3, %c0_13] : memref<1x27x32xf32, #tpu.memory_space<vmem>>, vector<1x24x32xf32>
    %c3_14 = arith.constant 3 : index
    %c0_15 = arith.constant 0 : index
    %21 = vector.load %arg2[%c3_14, %c0_15] : memref<4x32xf32, #tpu.memory_space<vmem>>, vector<1x32xf32>
    %22 = vector.shape_cast %21 : vector<1x32xf32> to vector<32xf32>
    %23 = vector.shape_cast %22 : vector<32xf32> to vector<1x1x32xf32>
    %24 = vector.broadcast %23 : vector<1x1x32xf32> to vector<1x24x32xf32>
    %25 = arith.mulf %20, %24 : vector<1x24x32xf32>
    %26 = arith.addf %19, %25 : vector<1x24x32xf32>
    %c0_16 = arith.constant 0 : index
    %c0_17 = arith.constant 0 : index
    %27 = vector.load %arg3[%c0_16, %c0_17] : memref<1x32xf32, #tpu.memory_space<vmem>>, vector<1x32xf32>
    %28 = vector.shape_cast %27 : vector<1x32xf32> to vector<32xf32>
    %29 = vector.shape_cast %28 : vector<32xf32> to vector<1x1x32xf32>
    %30 = vector.broadcast %29 : vector<1x1x32xf32> to vector<1x24x32xf32>
    %31 = arith.addf %26, %30 : vector<1x24x32xf32>
    %32 = vector.shape_cast %31 : vector<1x24x32xf32> to vector<24x32xf32>
    %c0_18 = arith.constant 0 : index
    %c0_19 = arith.constant 0 : index
    %33 = vector.load %arg4[%c0_18, %c0_19] : memref<32x32xf32, #tpu.memory_space<vmem>>, vector<32x32xf32>
    %cst = arith.constant dense<0.000000e+00> : vector<24x32xf32>
    %34 = tpu.matmul %32, %33, %cst {dimension_numbers = #tpu.dot_dimension_numbers<[1], [0], [0], [1], [0, 0, 1, 1], [], []>} : vector<24x32xf32>, vector<32x32xf32>, vector<24x32xf32> -> vector<24x32xf32>
    %c0_20 = arith.constant 0 : index
    %c0_21 = arith.constant 0 : index
    %35 = vector.load %arg5[%c0_20, %c0_21] : memref<1x32xf32, #tpu.memory_space<vmem>>, vector<1x32xf32>
    %36 = vector.shape_cast %35 : vector<1x32xf32> to vector<32xf32>
    %37 = vector.shape_cast %36 : vector<32xf32> to vector<1x32xf32>
    %38 = vector.broadcast %37 : vector<1x32xf32> to vector<24x32xf32>
    %39 = arith.addf %34, %38 : vector<24x32xf32>
    %c0_22 = arith.constant 0 : index
    %c0_23 = arith.constant 0 : index
    %40 = vector.load %arg6[%c0_22, %c0_23] : memref<32x1xf32, #tpu.memory_space<vmem>>, vector<32x1xf32>
    %cst_24 = arith.constant dense<0.000000e+00> : vector<24x1xf32>
    %41 = tpu.matmul %39, %40, %cst_24 {dimension_numbers = #tpu.dot_dimension_numbers<[1], [0], [0], [1], [0, 0, 1, 1], [], []>} : vector<24x32xf32>, vector<32x1xf32>, vector<24x1xf32> -> vector<24x1xf32>
    %42 = tpu.iota {dimensions = array<i32: 1>} : vector<24x4xi32>
    %cst_25 = arith.constant 0.000000e+00 : f32
    %43 = vector.broadcast %cst_25 : f32 to vector<24x4xf32>
    %c0_i32 = arith.constant 0 : i32
    %44 = vector.broadcast %c0_i32 : i32 to vector<24x4xi32>
    %45 = arith.cmpi eq, %42, %44 : vector<24x4xi32>
    %cst_26 = arith.constant 0.000000e+00 : f32
    %46 = vector.shape_cast %41 : vector<24x1xf32> to vector<24x1xf32>
    %47 = vector.broadcast %46 : vector<24x1xf32> to vector<24x4xf32>
    %48 = vector.broadcast %cst_26 : f32 to vector<24x4xf32>
    %49 = arith.select %45, %47, %48 : vector<24x4xi1>, vector<24x4xf32>
    %50 = arith.addf %43, %49 : vector<24x4xf32>
    %c0_27 = arith.constant 0 : index
    %c0_28 = arith.constant 0 : index
    %51 = vector.load %arg9[%c0_27, %c0_28] : memref<12x24xf32, #tpu.memory_space<vmem>>, vector<12x24xf32>
    %cst_29 = arith.constant dense<0.000000e+00> : vector<12x1xf32>
    %52 = tpu.matmul %51, %41, %cst_29 {dimension_numbers = #tpu.dot_dimension_numbers<[1], [0], [0], [1], [0, 0, 1, 1], [], []>} : vector<12x24xf32>, vector<24x1xf32>, vector<12x1xf32> -> vector<12x1xf32>
    %cst_30 = arith.constant 5.000000e-01 : f32
    %53 = vector.broadcast %cst_30 : f32 to vector<12x1xf32>
    %54 = arith.mulf %52, %53 : vector<12x1xf32>
    %c0_31 = arith.constant 0 : index
    %c0_32 = arith.constant 0 : index
    %55 = vector.load %arg10[%c0_31, %c0_32] : memref<24x12xf32, #tpu.memory_space<vmem>>, vector<24x12xf32>
    %cst_33 = arith.constant dense<0.000000e+00> : vector<24x1xf32>
    %56 = tpu.matmul %55, %54, %cst_33 {dimension_numbers = #tpu.dot_dimension_numbers<[1], [0], [0], [1], [0, 0, 1, 1], [], []>} : vector<24x12xf32>, vector<12x1xf32>, vector<24x1xf32> -> vector<24x1xf32>
    %c1_i32 = arith.constant 1 : i32
    %57 = vector.broadcast %c1_i32 : i32 to vector<24x4xi32>
    %58 = arith.cmpi eq, %42, %57 : vector<24x4xi32>
    %cst_34 = arith.constant 0.000000e+00 : f32
    %59 = vector.shape_cast %56 : vector<24x1xf32> to vector<24x1xf32>
    %60 = vector.broadcast %59 : vector<24x1xf32> to vector<24x4xf32>
    %61 = vector.broadcast %cst_34 : f32 to vector<24x4xf32>
    %62 = arith.select %58, %60, %61 : vector<24x4xi1>, vector<24x4xf32>
    %63 = arith.addf %50, %62 : vector<24x4xf32>
    %c0_35 = arith.constant 0 : index
    %c0_36 = arith.constant 0 : index
    %64 = vector.load %arg11[%c0_35, %c0_36] : memref<8x24xf32, #tpu.memory_space<vmem>>, vector<8x24xf32>
    %cst_37 = arith.constant dense<0.000000e+00> : vector<8x1xf32>
    %65 = tpu.matmul %64, %41, %cst_37 {dimension_numbers = #tpu.dot_dimension_numbers<[1], [0], [0], [1], [0, 0, 1, 1], [], []>} : vector<8x24xf32>, vector<24x1xf32>, vector<8x1xf32> -> vector<8x1xf32>
    %cst_38 = arith.constant 0.333333343 : f32
    %66 = vector.broadcast %cst_38 : f32 to vector<8x1xf32>
    %67 = arith.mulf %65, %66 : vector<8x1xf32>
    %c0_39 = arith.constant 0 : index
    %c0_40 = arith.constant 0 : index
    %68 = vector.load %arg12[%c0_39, %c0_40] : memref<24x8xf32, #tpu.memory_space<vmem>>, vector<24x8xf32>
    %cst_41 = arith.constant dense<0.000000e+00> : vector<24x1xf32>
    %69 = tpu.matmul %68, %67, %cst_41 {dimension_numbers = #tpu.dot_dimension_numbers<[1], [0], [0], [1], [0, 0, 1, 1], [], []>} : vector<24x8xf32>, vector<8x1xf32>, vector<24x1xf32> -> vector<24x1xf32>
    %c2_i32 = arith.constant 2 : i32
    %70 = vector.broadcast %c2_i32 : i32 to vector<24x4xi32>
    %71 = arith.cmpi eq, %42, %70 : vector<24x4xi32>
    %cst_42 = arith.constant 0.000000e+00 : f32
    %72 = vector.shape_cast %69 : vector<24x1xf32> to vector<24x1xf32>
    %73 = vector.broadcast %72 : vector<24x1xf32> to vector<24x4xf32>
    %74 = vector.broadcast %cst_42 : f32 to vector<24x4xf32>
    %75 = arith.select %71, %73, %74 : vector<24x4xi1>, vector<24x4xf32>
    %76 = arith.addf %63, %75 : vector<24x4xf32>
    %c0_43 = arith.constant 0 : index
    %c0_44 = arith.constant 0 : index
    %77 = vector.load %arg13[%c0_43, %c0_44] : memref<6x24xf32, #tpu.memory_space<vmem>>, vector<6x24xf32>
    %cst_45 = arith.constant dense<0.000000e+00> : vector<6x1xf32>
    %78 = tpu.matmul %77, %41, %cst_45 {dimension_numbers = #tpu.dot_dimension_numbers<[1], [0], [0], [1], [0, 0, 1, 1], [], []>} : vector<6x24xf32>, vector<24x1xf32>, vector<6x1xf32> -> vector<6x1xf32>
    %cst_46 = arith.constant 2.500000e-01 : f32
    %79 = vector.broadcast %cst_46 : f32 to vector<6x1xf32>
    %80 = arith.mulf %78, %79 : vector<6x1xf32>
    %c0_47 = arith.constant 0 : index
    %c0_48 = arith.constant 0 : index
    %81 = vector.load %arg14[%c0_47, %c0_48] : memref<24x6xf32, #tpu.memory_space<vmem>>, vector<24x6xf32>
    %cst_49 = arith.constant dense<0.000000e+00> : vector<24x1xf32>
    %82 = tpu.matmul %81, %80, %cst_49 {dimension_numbers = #tpu.dot_dimension_numbers<[1], [0], [0], [1], [0, 0, 1, 1], [], []>} : vector<24x6xf32>, vector<6x1xf32>, vector<24x1xf32> -> vector<24x1xf32>
    %c3_i32 = arith.constant 3 : i32
    %83 = vector.broadcast %c3_i32 : i32 to vector<24x4xi32>
    %84 = arith.cmpi eq, %42, %83 : vector<24x4xi32>
    %cst_50 = arith.constant 0.000000e+00 : f32
    %85 = vector.shape_cast %82 : vector<24x1xf32> to vector<24x1xf32>
    %86 = vector.broadcast %85 : vector<24x1xf32> to vector<24x4xf32>
    %87 = vector.broadcast %cst_50 : f32 to vector<24x4xf32>
    %88 = arith.select %84, %86, %87 : vector<24x4xi1>, vector<24x4xf32>
    %89 = arith.addf %76, %88 : vector<24x4xf32>
    %c0_51 = arith.constant 0 : index
    %c0_52 = arith.constant 0 : index
    %90 = vector.load %arg7[%c0_51, %c0_52] : memref<1x1xf32, #tpu.memory_space<vmem>>, vector<1x1xf32>
    %91 = vector.extract %90[0, 0] : f32 from vector<1x1xf32>
    %92 = vector.broadcast %91 : f32 to vector<24x4xf32>
    %93 = arith.addf %89, %92 : vector<24x4xf32>
    %cst_53 = arith.constant dense<0xFF800000> : vector<24xf32>
    %94 = vector.multi_reduction <maximumf>, %93, %cst_53 [1] : vector<24x4xf32> to vector<24xf32>
    %95 = vector.shape_cast %94 : vector<24xf32> to vector<24x1xf32>
    %96 = vector.broadcast %95 : vector<24x1xf32> to vector<24x4xf32>
    %97 = arith.subf %93, %96 : vector<24x4xf32>
    %98 = math.exp %97 : vector<24x4xf32>
    %cst_54 = arith.constant dense<0.000000e+00> : vector<24xf32>
    %99 = vector.multi_reduction <add>, %98, %cst_54 [1] : vector<24x4xf32> to vector<24xf32>
    %100 = vector.shape_cast %99 : vector<24xf32> to vector<24x1xf32>
    %101 = tpu.reciprocal %100 {approx = true} : vector<24x1xf32> -> vector<24x1xf32>
    %102 = vector.broadcast %101 : vector<24x1xf32> to vector<24x4xf32>
    %103 = arith.mulf %98, %102 : vector<24x4xf32>
    %cst_55 = arith.constant dense<0.000000e+00> : vector<24x24xf32>
    %104 = tpu.matmul %103, %103, %cst_55 {dimension_numbers = #tpu.dot_dimension_numbers<[1], [1], [0], [0], [0, 0, 1, 0], [], []>} : vector<24x4xf32>, vector<24x4xf32>, vector<24x24xf32> -> vector<24x24xf32>
    %cst_56 = arith.constant dense<0xFF800000> : vector<24xf32>
    %105 = vector.multi_reduction <maximumf>, %104, %cst_56 [1] : vector<24x24xf32> to vector<24xf32>
    %106 = vector.shape_cast %105 : vector<24xf32> to vector<24x1xf32>
    %107 = vector.broadcast %106 : vector<24x1xf32> to vector<24x24xf32>
    %108 = arith.subf %104, %107 : vector<24x24xf32>
    %109 = math.exp %108 : vector<24x24xf32>
    %cst_57 = arith.constant dense<0.000000e+00> : vector<24xf32>
    %110 = vector.multi_reduction <add>, %109, %cst_57 [1] : vector<24x24xf32> to vector<24xf32>
    %111 = vector.shape_cast %110 : vector<24xf32> to vector<24x1xf32>
    %112 = tpu.reciprocal %111 {approx = true} : vector<24x1xf32> -> vector<24x1xf32>
    %113 = vector.broadcast %112 : vector<24x1xf32> to vector<24x24xf32>
    %114 = arith.mulf %109, %113 : vector<24x24xf32>
    %cst_58 = arith.constant dense<0.000000e+00> : vector<24x4xf32>
    %115 = tpu.matmul %114, %103, %cst_58 {dimension_numbers = #tpu.dot_dimension_numbers<[1], [0], [0], [1], [0, 0, 1, 1], [], []>} : vector<24x24xf32>, vector<24x4xf32>, vector<24x4xf32> -> vector<24x4xf32>
    %cst_59 = arith.constant 0.000000e+00 : f32
    %116 = vector.broadcast %cst_59 : f32 to vector<24x32xf32>
    %117 = vector.extract_strided_slice %115 {offsets = [0, 0], sizes = [24, 1], strides = [1, 1]} : vector<24x4xf32> to vector<24x1xf32>
    %118 = vector.broadcast %117 : vector<24x1xf32> to vector<24x32xf32>
    %119 = arith.mulf %39, %118 : vector<24x32xf32>
    %120 = arith.addf %116, %119 : vector<24x32xf32>
    %121 = vector.extract_strided_slice %115 {offsets = [0, 1], sizes = [24, 1], strides = [1, 1]} : vector<24x4xf32> to vector<24x1xf32>
    %c0_60 = arith.constant 0 : index
    %c0_61 = arith.constant 0 : index
    %122 = vector.load %arg9[%c0_60, %c0_61] : memref<12x24xf32, #tpu.memory_space<vmem>>, vector<12x24xf32>
    %cst_62 = arith.constant dense<0.000000e+00> : vector<12x32xf32>
    %123 = tpu.matmul %122, %39, %cst_62 {dimension_numbers = #tpu.dot_dimension_numbers<[1], [0], [0], [1], [0, 0, 1, 1], [], []>} : vector<12x24xf32>, vector<24x32xf32>, vector<12x32xf32> -> vector<12x32xf32>
    %cst_63 = arith.constant 5.000000e-01 : f32
    %124 = vector.broadcast %cst_63 : f32 to vector<12x32xf32>
    %125 = arith.mulf %123, %124 : vector<12x32xf32>
    %c0_64 = arith.constant 0 : index
    %c0_65 = arith.constant 0 : index
    %126 = vector.load %arg10[%c0_64, %c0_65] : memref<24x12xf32, #tpu.memory_space<vmem>>, vector<24x12xf32>
    %cst_66 = arith.constant dense<0.000000e+00> : vector<24x32xf32>
    %127 = tpu.matmul %126, %125, %cst_66 {dimension_numbers = #tpu.dot_dimension_numbers<[1], [0], [0], [1], [0, 0, 1, 1], [], []>} : vector<24x12xf32>, vector<12x32xf32>, vector<24x32xf32> -> vector<24x32xf32>
    %128 = vector.broadcast %121 : vector<24x1xf32> to vector<24x32xf32>
    %129 = arith.mulf %127, %128 : vector<24x32xf32>
    %130 = arith.addf %120, %129 : vector<24x32xf32>
    %131 = vector.extract_strided_slice %115 {offsets = [0, 2], sizes = [24, 1], strides = [1, 1]} : vector<24x4xf32> to vector<24x1xf32>
    %c0_67 = arith.constant 0 : index
    %c0_68 = arith.constant 0 : index
    %132 = vector.load %arg11[%c0_67, %c0_68] : memref<8x24xf32, #tpu.memory_space<vmem>>, vector<8x24xf32>
    %cst_69 = arith.constant dense<0.000000e+00> : vector<8x32xf32>
    %133 = tpu.matmul %132, %39, %cst_69 {dimension_numbers = #tpu.dot_dimension_numbers<[1], [0], [0], [1], [0, 0, 1, 1], [], []>} : vector<8x24xf32>, vector<24x32xf32>, vector<8x32xf32> -> vector<8x32xf32>
    %cst_70 = arith.constant 0.333333343 : f32
    %134 = vector.broadcast %cst_70 : f32 to vector<8x32xf32>
    %135 = arith.mulf %133, %134 : vector<8x32xf32>
    %c0_71 = arith.constant 0 : index
    %c0_72 = arith.constant 0 : index
    %136 = vector.load %arg12[%c0_71, %c0_72] : memref<24x8xf32, #tpu.memory_space<vmem>>, vector<24x8xf32>
    %cst_73 = arith.constant dense<0.000000e+00> : vector<24x32xf32>
    %137 = tpu.matmul %136, %135, %cst_73 {dimension_numbers = #tpu.dot_dimension_numbers<[1], [0], [0], [1], [0, 0, 1, 1], [], []>} : vector<24x8xf32>, vector<8x32xf32>, vector<24x32xf32> -> vector<24x32xf32>
    %138 = vector.broadcast %131 : vector<24x1xf32> to vector<24x32xf32>
    %139 = arith.mulf %137, %138 : vector<24x32xf32>
    %140 = arith.addf %130, %139 : vector<24x32xf32>
    %141 = vector.extract_strided_slice %115 {offsets = [0, 3], sizes = [24, 1], strides = [1, 1]} : vector<24x4xf32> to vector<24x1xf32>
    %c0_74 = arith.constant 0 : index
    %c0_75 = arith.constant 0 : index
    %142 = vector.load %arg13[%c0_74, %c0_75] : memref<6x24xf32, #tpu.memory_space<vmem>>, vector<6x24xf32>
    %cst_76 = arith.constant dense<0.000000e+00> : vector<6x32xf32>
    %143 = tpu.matmul %142, %39, %cst_76 {dimension_numbers = #tpu.dot_dimension_numbers<[1], [0], [0], [1], [0, 0, 1, 1], [], []>} : vector<6x24xf32>, vector<24x32xf32>, vector<6x32xf32> -> vector<6x32xf32>
    %cst_77 = arith.constant 2.500000e-01 : f32
    %144 = vector.broadcast %cst_77 : f32 to vector<6x32xf32>
    %145 = arith.mulf %143, %144 : vector<6x32xf32>
    %c0_78 = arith.constant 0 : index
    %c0_79 = arith.constant 0 : index
    %146 = vector.load %arg14[%c0_78, %c0_79] : memref<24x6xf32, #tpu.memory_space<vmem>>, vector<24x6xf32>
    %cst_80 = arith.constant dense<0.000000e+00> : vector<24x32xf32>
    %147 = tpu.matmul %146, %145, %cst_80 {dimension_numbers = #tpu.dot_dimension_numbers<[1], [0], [0], [1], [0, 0, 1, 1], [], []>} : vector<24x6xf32>, vector<6x32xf32>, vector<24x32xf32> -> vector<24x32xf32>
    %148 = vector.broadcast %141 : vector<24x1xf32> to vector<24x32xf32>
    %149 = arith.mulf %147, %148 : vector<24x32xf32>
    %150 = arith.addf %140, %149 : vector<24x32xf32>
    %c0_81 = arith.constant 0 : index
    %c0_82 = arith.constant 0 : index
    %151 = vector.load %arg8[%c0_81, %c0_82] : memref<6x24xf32, #tpu.memory_space<vmem>>, vector<6x24xf32>
    %cst_83 = arith.constant dense<0.000000e+00> : vector<6x32xf32>
    %152 = tpu.matmul %151, %150, %cst_83 {dimension_numbers = #tpu.dot_dimension_numbers<[1], [0], [0], [1], [0, 0, 1, 1], [], []>} : vector<6x24xf32>, vector<24x32xf32>, vector<6x32xf32> -> vector<6x32xf32>
    %c0_84 = arith.constant 0 : index
    %c0_85 = arith.constant 0 : index
    %c0_86 = arith.constant 0 : index
    %153 = vector.load %arg15[%c0_84, %c0_85, %c0_86] : memref<1x6x32xf32, #tpu.memory_space<vmem>>, vector<1x6x32xf32>
    %154 = vector.shape_cast %153 : vector<1x6x32xf32> to vector<6x32xf32>
    %155 = vector.shape_cast %152 : vector<6x32xf32> to vector<1x6x32xf32>
    tpu.vector_store %arg15[%c0_84, %c0_85, %c0_86], %155 {strides = array<i32>} : memref<1x6x32xf32, #tpu.memory_space<vmem>>, vector<1x6x32xf32>,
    return
  }
  func.func @transform_0(%arg0: i32) -> (i32, i32, i32) {
    %c0_i32 = arith.constant 0 : i32
    %c0_i32_0 = arith.constant 0 : i32
    %c0_i32_1 = arith.constant 0 : i32
    return %arg0, %c0_i32, %c0_i32_0 : i32, i32, i32
  }
  func.func @transform_1(%arg0: i32) -> (i32, i32) {
    %c0_i32 = arith.constant 0 : i32
    %c0_i32_0 = arith.constant 0 : i32
    %c0_i32_1 = arith.constant 0 : i32
    return %c0_i32, %c0_i32_0 : i32, i32
  }
  func.func @transform_2(%arg0: i32) -> (i32, i32) {
    %c0_i32 = arith.constant 0 : i32
    %c0_i32_0 = arith.constant 0 : i32
    %c0_i32_1 = arith.constant 0 : i32
    return %c0_i32, %c0_i32_0 : i32, i32
  }
  func.func @transform_3(%arg0: i32) -> (i32, i32) {
    %c0_i32 = arith.constant 0 : i32
    %c0_i32_0 = arith.constant 0 : i32
    %c0_i32_1 = arith.constant 0 : i32
    return %c0_i32, %c0_i32_0 : i32, i32
  }
  func.func @transform_4(%arg0: i32) -> (i32, i32) {
    %c0_i32 = arith.constant 0 : i32
    %c0_i32_0 = arith.constant 0 : i32
    %c0_i32_1 = arith.constant 0 : i32
    return %c0_i32, %c0_i32_0 : i32, i32
  }
  func.func @transform_5(%arg0: i32) -> (i32, i32) {
    %c0_i32 = arith.constant 0 : i32
    %c0_i32_0 = arith.constant 0 : i32
    %c0_i32_1 = arith.constant 0 : i32
    return %c0_i32, %c0_i32_0 : i32, i32
  }
  func.func @transform_6(%arg0: i32) -> (i32, i32) {
    %c0_i32 = arith.constant 0 : i32
    %c0_i32_0 = arith.constant 0 : i32
    %c0_i32_1 = arith.constant 0 : i32
    return %c0_i32, %c0_i32_0 : i32, i32
  }
  func.func @transform_7(%arg0: i32) -> (i32, i32) {
    %c0_i32 = arith.constant 0 : i32
    %c0_i32_0 = arith.constant 0 : i32
    %c0_i32_1 = arith.constant 0 : i32
    return %c0_i32, %c0_i32_0 : i32, i32
  }
  func.func @transform_8(%arg0: i32) -> (i32, i32) {
    %c0_i32 = arith.constant 0 : i32
    %c0_i32_0 = arith.constant 0 : i32
    %c0_i32_1 = arith.constant 0 : i32
    return %c0_i32, %c0_i32_0 : i32, i32
  }
  func.func @transform_9(%arg0: i32) -> (i32, i32) {
    %c0_i32 = arith.constant 0 : i32
    %c0_i32_0 = arith.constant 0 : i32
    %c0_i32_1 = arith.constant 0 : i32
    return %c0_i32, %c0_i32_0 : i32, i32
  }
  func.func @transform_10(%arg0: i32) -> (i32, i32) {
    %c0_i32 = arith.constant 0 : i32
    %c0_i32_0 = arith.constant 0 : i32
    %c0_i32_1 = arith.constant 0 : i32
    return %c0_i32, %c0_i32_0 : i32, i32
  }
  func.func @transform_11(%arg0: i32) -> (i32, i32) {
    %c0_i32 = arith.constant 0 : i32
    %c0_i32_0 = arith.constant 0 : i32
    %c0_i32_1 = arith.constant 0 : i32
    return %c0_i32, %c0_i32_0 : i32, i32
  }
  func.func @transform_12(%arg0: i32) -> (i32, i32) {
    %c0_i32 = arith.constant 0 : i32
    %c0_i32_0 = arith.constant 0 : i32
    %c0_i32_1 = arith.constant 0 : i32
    return %c0_i32, %c0_i32_0 : i32, i32
  }
  func.func @transform_13(%arg0: i32) -> (i32, i32) {
    %c0_i32 = arith.constant 0 : i32
    %c0_i32_0 = arith.constant 0 : i32
    %c0_i32_1 = arith.constant 0 : i32
    return %c0_i32, %c0_i32_0 : i32, i32
  }
  func.func @transform_14(%arg0: i32) -> (i32, i32, i32) {
    %c0_i32 = arith.constant 0 : i32
    %c0_i32_0 = arith.constant 0 : i32
    %c0_i32_1 = arith.constant 0 : i32
    return %arg0, %c0_i32, %c0_i32_0 : i32, i32, i32
  }
}

</mosaic_0001>

<bundles_post_ra>
// kernel: tpu_custom_call.1
= control target key start
LH: loop header
LB: loop body
LE: loop exit
PB: predicated region body
PF: predicated region fallthrough
CT: control target
= control target key end

     0   :  { %s2800_s15 = smov 0   ;;  %s3174_s0 = inlined_call_operand.vmem [shape: f32[2,27,32], index: 0, kind: input, shape index: {}]   ;;  %s3175_s1 = inlined_call_operand.vmem [shape: f32[4,32], index: 1, kind: input, shape index: {}]   ;;  %s3176_s2 = inlined_call_operand.vmem [shape: f32[1,32], index: 2, kind: input, shape index: {}]   ;;  %s3177_s3 = inlined_call_operand.vmem [shape: f32[32,32], index: 3, kind: input, shape index: {}]   ;;  %s3178_s4 = inlined_call_operand.vmem [shape: f32[1,32], index: 4, kind: input, shape index: {}]   ;;  %s3179_s5 = inlined_call_operand.vmem [shape: f32[32,1], index: 5, kind: input, shape index: {}]   ;;  %s3180_s6 = inlined_call_operand.<no memory space> [shape: f32[1,1], index: 6, kind: input, shape index: {}]   ;;  %s3181_s7 = inlined_call_operand.vmem [shape: f32[6,24], index: 7, kind: input, shape index: {}]   ;;  %s3182_s8 = inlined_call_operand.vmem [shape: f32[12,24], index: 8, kind: input, shape index: {}]   ;;  %s3183_s9 = inlined_call_operand.vmem [shape: f32[24,12], index: 9, kind: input, shape index: {}]   ;;  %s3184_s10 = inlined_call_operand.vmem [shape: f32[8,24], index: 10, kind: input, shape index: {}]   ;;  %s3185_s11 = inlined_call_operand.vmem [shape: f32[24,8], index: 11, kind: input, shape index: {}]   ;;  %s3186_s12 = inlined_call_operand.vmem [shape: f32[6,24], index: 12, kind: input, shape index: {}]   ;;  %s3187_s13 = inlined_call_operand.vmem [shape: f32[24,6], index: 13, kind: input, shape index: {}]   ;;  %s3188_s14 = inlined_call_operand.vmem [shape: f32[2,6,32], index: 14, kind: output, shape index: {}]  }
   0x1   :  { %v19_v0 = vstv %s3180_s6 }
   0x2   :  { %20 = vst [vmem:[#allocation2] sm:$0x1] %v19_v0 }
   0x3 LB: > { %s2258_s16 = sadd.s32 4294967295, %s2712_s15   ;;  %p2262_p0 = scmp.ge.s32.totalorder %s2712_s15, 1  ;;  %s2712_s15 = sphi %s2800_s15, %s26_s15  }
   0x4   : > { %p414_p1 = scmp.lt.s32.totalorder %s2712_s15, 3 }
   0x6   : > { %p415_p2 = pnand %p2262_p0, %p414_p1 }
   0x7   : > { %v531_v1 = vld [vmem:[%s3177_s3] sm:$0xff] (!%p415_p2)  ;;  %v532_v2 = vld [vmem:[%s3177_s3 + $0x8] sm:$0xff] (!%p415_p2)  ;;  %v533_v3 = vld [vmem:[%s3177_s3 + $0x10] sm:$0xff] (!%p415_p2)  ;;  %v2714_v4 = vmov (!%p415_p2), 0.0|0.0   ;;  %vm2715_vm0 = vmmov (!%p415_p2), 0   ;;  %v2716_v7 = vmov (!%p415_p2), 0.0  }
   0x8   : > { %418 = sbr.rel (%p415_p2) target bundleno = 2787 (0xae3), region = 76  ;;  %2600 = vmatprep.subr.bf16.mxu0 (!%p415_p2), %v2714_v4  ;;  %v2601_v5 = vpack.c.bf16 (!%p415_p2), %v532_v2, %v531_v1  ;;  %v534_v6 = vld [vmem:[%s3177_s3 + $0x18] sm:$0xff] (!%p415_p2)  ;;  %2411 = vmatprep.mubr.msk.f32.mxu0 (!%p415_p2), %vm2715_vm0, %v2716_v7  ;;  %p459_p3 = scmp.lt.s32.totalorder (!%p415_p2), %s2258_s16, 1  ;;  %v632_v9 = vld [vmem:[%s3179_s5] sm:$0xff] (!%p415_p2)  ;;  %v633_v10 = vld [vmem:[%s3179_s5 + $0x8] sm:$0xff] (!%p415_p2)  ;;  %vm542_vm1 = vcmask (!%p415_p2), 261120  }
   0x9   : > { %2606 = vmatprep.subr.bf16.mxu1 (!%p415_p2), %v2714_v4  ;;  %2428 = vmatprep.mubr.msk.f32.mxu1 (!%p415_p2), %vm2715_vm0, %v2716_v7  ;;  %v2604_v8 = vpack.c.bf16 (!%p415_p2), %v534_v6, %v533_v3  ;;  %v2266_v11 = vld [vmem:[%s3175_s1] ss:$0 sm:$0xff] (!%p415_p2)  ;;  %v2607_v12 = vpack.c.bf16 (!%p415_p2), %v633_v10, %v632_v9  ;;  %v2267_v13 = vld [vmem:[%s3175_s1 + $0x1] ss:$0 sm:$0xff] (!%p415_p2)  ;;  %v2268_v14 = vld [vmem:[%s3175_s1 + $0x2] ss:$0 sm:$0xff] (!%p415_p2) }
   0xa   : > { %2602 = vmatpush3.bf16.msra.mxu0 (!%p415_p2), %v2601_v5  ;;  %v2269_v15 = vld [vmem:[%s3175_s1 + $0x3] ss:$0 sm:$0xff] (!%p415_p2)  ;;  %v2270_v42 = vld [vmem:[%s3176_s2] ss:$0 sm:$0xff] (!%p415_p2)  ;;  %v634_v53 = vld [vmem:[%s3179_s5 + $0x10] sm:$0xff] (!%p415_p2)  ;;  %v2717_v56 = vmov (!%p415_p2), 0  }
   0xb   : > { %2603 = vmatprep.subr.bf16.mxu0 (!%p415_p2), %v2714_v4  ;;  %2608 = vmatpush3.bf16.msra.mxu1 (!%p415_p2), %v2607_v12  ;;  %v635_v54 = vld [vmem:[%s3179_s5 + $0x18] sm:$0xff] (!%p415_p2)  ;;  %v2271_v57 = vld [vmem:[%s3178_s4] ss:$0 sm:$0xff] (!%p415_p2)  ;;  %vm751_vm2 = vcmask (!%p415_p2), 195584   ;;  %vm1032_vm3 = vcmask (!%p415_p2), 64512   ;;  %vm848_vm4 = vcmask (!%p415_p2), 1043456  }
   0xc   : > { %2609 = vmatprep.subr.bf16.mxu1 (!%p415_p2), %v2714_v4  ;;  %v2610_v55 = vpack.c.bf16 (!%p415_p2), %v635_v54, %v634_v53  ;;  %2668 = vset.pattern.permute.xlu0 (!%p415_p2), %v2717_v56  ;;  %v2895_v3 = vld [vmem:[%s3182_s8] sm:$0xff] (!%p415_p2)  ;;  %vm2718_vm5 = vmmov (!%p415_p2), 1   ;;  %vm838_vm7 = vcmask (!%p415_p2), 97280   ;;  %vm1232_vm8 = vcmask (!%p415_p2), 1045504  }
   0xd   : > { %2669 = vset.pattern.permute.xlu1 (!%p415_p2), %v2717_v56  ;;  %vm2932_vm6 = vmpackc.low (!%p415_p2), %vm848_vm4, %vm2718_vm5  ;;  %vm1222_vm9 = vcmask (!%p415_p2), 48128   ;;  %vm1344_vm14 = vcmask (!%p415_p2), 31744  }
   0xe   : > { %2605 = vmatpush3.bf16.msra.mxu0 (!%p415_p2), %v2604_v8  ;;  %vm2628_vm15 = vmpackc.low (!%p415_p2), %vm1344_vm14, %vm1344_vm14 }
   0xf   : > { %s3192_s16 = smov (!%p459_p3, %s2258_s16), 1  ;;  %2620 = vmatprep.subr.bf16.mxu0 %v2714_v4  ;;  %2611 = vmatpush3.bf16.msra.mxu1 %v2610_v55 }
  0x10   : > { %s2320_s30 = sshll.u32 %s3192_s16, 5  ;;  %s2265_s18 = sshll.u32 %s3192_s16, 3 }
  0x11   : > { %s463_s22 = scalar_lea.vmem %s3174_s0, %s2320_s30  ;;  %s467_s20 = scalar_lea.vmem %s3188_s14, %s2265_s18 }
  0x12   : > { %v468_v16 = vld [vmem:[%s463_s22] sm:$0xff]  ;;  %v469_v23 = vld [vmem:[%s463_s22 + $0x8] sm:$0xff]  ;;  %v470_v29 = vld [vmem:[%s463_s22 + $0x10] sm:$0xff] }
  0x13   : > { %v479_v17 = vld [vmem:[%s463_s22 + $0x1] sm:$0xff]  ;;  %v476_v19 = vmul.f32 %v2266_v11, %v468_v16  ;;  %v480_v24 = vld [vmem:[%s463_s22 + $0x9] sm:$0xff]  ;;  %v477_v25 = vmul.f32 %v2266_v11, %v469_v23  ;;  %v478_v33 = vmul.f32 %v2266_v11, %v470_v29  ;;  %v481_v34 = vld [vmem:[%s463_s22 + $0x11] sm:$0xff] }
  0x14   : > { %v493_v18 = vld [vmem:[%s463_s22 + $0x2] sm:$0xff]  ;;  %v487_v20 = vmul.f32 %v2267_v13, %v479_v17  ;;  %v488_v26 = vmul.f32 %v2267_v13, %v480_v24  ;;  %v494_v27 = vld [vmem:[%s463_s22 + $0xa] sm:$0xff]  ;;  %v495_v35 = vld [vmem:[%s463_s22 + $0x12] sm:$0xff]  ;;  %v489_v38 = vmul.f32 %v2267_v13, %v481_v34 }
  0x15   : > { %v501_v21 = vmul.f32 %v2268_v14, %v493_v18  ;;  %v507_v22 = vld [vmem:[%s463_s22 + $0x3] sm:$0xff]  ;;  %v508_v28 = vld [vmem:[%s463_s22 + $0xb] sm:$0xff]  ;;  %v502_v32 = vmul.f32 %v2268_v14, %v494_v27  ;;  %v503_v39 = vmul.f32 %v2268_v14, %v495_v35  ;;  %v509_v40 = vld [vmem:[%s463_s22 + $0x13] sm:$0xff] }
  0x16   : > { %v490_v30 = vadd.f32 %v487_v20, %v476_v19  ;;  %v515_v31 = vmul.f32 %v2269_v15, %v507_v22  ;;  %v491_v36 = vadd.f32 %v488_v26, %v477_v25  ;;  %v516_v37 = vmul.f32 %v2269_v15, %v508_v28  ;;  %v2906_v13 = vld [vmem:[%s3184_s10] sm:$0xff]  ;;  %v2911_v14 = vld [vmem:[%s3182_s8 + $0x8] sm:$0xf]  ;;  %v2974_v28 = vld [vmem:[%s3183_s9 + $0x10] sm:$0xff] }
  0x17   : > { %v492_v44 = vadd.f32 %v489_v38, %v478_v33  ;;  %v517_v46 = vmul.f32 %v2269_v15, %v509_v40  ;;  %v2928_v16 = vld [vmem:[%s3185_s11] sm:$0xff]  ;;  %v2942_v25 = vld [vmem:[%s3185_s11 + $0x8] sm:$0xff] }
  0x18   : > { %v504_v41 = vadd.f32 %v501_v21, %v490_v30  ;;  %v505_v43 = vadd.f32 %v502_v32, %v491_v36  ;;  %v2949_v26 = vld [vmem:[%s3183_s9] sm:$0xff]  ;;  %v2963_v27 = vld [vmem:[%s3183_s9 + $0x8] sm:$0xff]  ;;  %v2993_v30 = vld [vmem:[%s3185_s11 + $0x10] sm:$0xff] }
  0x19   : > { %v506_v48 = vadd.f32 %v503_v39, %v492_v44  ;;  %v2984_v29 = vld [vmem:[%s3186_s12] sm:$0x3f] }
  0x1a   : > { %v518_v45 = vadd.f32 %v515_v31, %v504_v41  ;;  %v519_v47 = vadd.f32 %v516_v37, %v505_v43  ;;  %v3002_v44 = vld [vmem:[%s3187_s13] sm:$0xff] }
  0x1b   : > { %v520_v51 = vadd.f32 %v517_v46, %v506_v48  ;;  %v3022_v46 = vld [vmem:[%s3187_s13 + $0x10] sm:$0xff] }
  0x1c   : > { %v528_v49 = vadd.f32 %v2270_v42, %v518_v45  ;;  %v529_v50 = vadd.f32 %v2270_v42, %v519_v47  ;;  %v3013_v45 = vld [vmem:[%s3187_s13 + $0x8] sm:$0xff] }
  0x1d   : > { %v530_v52 = vadd.f32 %v2270_v42, %v520_v51 }
  0x1e   : > { %2412 = vmatmul.mubr.msk.f32.vlgmr.msra.gmra.mrb[0].mxu0 %vm542_vm1, %v528_v49  ;;  %v1338_v49 = vld [vmem:[#allocation2] sm:$0x1] }
  0x1f   : > { %2414 = vmatprep.mubr.msk.f32.mxu0 %vm2715_vm0, %v2716_v7  ;;  %2650 = vpush %v1338_v49 }
  0x22   : > { %2415 = vmatmul.mubr.msk.f32.gmra.mrb[2].mxu0 %vm542_vm1, %v529_v50 }
  0x23   : > { %2417 = vmatprep.mubr.msk.f32.mxu0 %vm2715_vm0, %v2716_v7 }
  0x26   : > { %2418 = vmatmul.mubr.msk.f32.gmra.mrb[4].mxu0 %vm542_vm1, %v530_v52 }
  0x27   : > { %2465 = vmatprep.mubr.msk.f32.mxu0 %vm2715_vm0, %v2716_v7 }
  0x50   : > { %s2651_s29 = spop %2650 }
  0xf1   : > { %v618_v58 = vpop.f32.mrb[0].mxu0 }
  0xf2   : > { %v2876_v59 = vadd.f32 %v2271_v57, %v618_v58  ;;  %v2413_v60 = vpop.f32.mrb[1].mxu0  ;;  %v725_v58 = vlaneseq }
  0xf4   : > { %2429 = vmatmul.mubr.msk.f32.vlgmr.msra.gmra.mrb[0].mxu1 %vm542_vm1, %v2876_v59 }
  0xf5   : > { %v623_v61 = vpop.f32.mrb[2].mxu0  ;;  %2431 = vmatprep.mubr.msk.f32.mxu1 %vm2715_vm0, %v2716_v7 }
  0xf6   : > { %v2882_v62 = vadd.f32 %v2271_v57, %v623_v61  ;;  %v2416_v63 = vpop.f32.mrb[3].mxu0  ;;  %v726_v61 = vand.u32 127, %v725_v58 }
  0xf8   : > { %2432 = vmatmul.mubr.msk.f32.gmra.mrb[2].mxu1 %vm542_vm1, %v2882_v62  ;;  %vm932_vm10 = vcmp.eq.s32.totalorder %v726_v61, 1  ;;  %vm727_vm11 = vcmp.eq.s32.totalorder %v726_v61, 0  ;;  %vm1122_vm12 = vcmp.eq.s32.totalorder %v726_v61, 2  ;;  %vm1316_vm13 = vcmp.eq.s32.totalorder %v726_v61, 3 }
  0xf9   : > { %v628_v0 = vpop.f32.mrb[4].mxu0  ;;  %2434 = vmatprep.mubr.msk.f32.mxu1 %vm2715_vm0, %v2716_v7 }
  0xfa   : > { %v2888_v1 = vadd.f32 %v2271_v57, %v628_v0  ;;  %v2419_v2 = vpop.f32.mrb[5].mxu0 }
  0xfc   : > { %2435 = vmatmul.mubr.msk.f32.gmra.mrb[4].mxu1 %vm542_vm1, %v2888_v1 }
  0xfd   : > { %2443 = vmatprep.mubr.msk.f32.mxu1 %vm751_vm2, %v2895_v3 }
 0x1c7   : > { %v711_v5 = vpop.f32.mrb[0].mxu1 }
 0x1c8   : > { %730 = vperm.xlu0 %2668, %v711_v5   ;;  %v2430_v6 = vpop.f32.mrb[1].mxu1 }
 0x1cb   : > { %v716_v8 = vpop.f32.mrb[2].mxu1 }
 0x1cc   : > { %v2612_v9 = vpack.c.bf16 %v716_v8, %v711_v5  ;;  %735 = vperm.xlu0 %2668, %v716_v8   ;;  %v2433_v10 = vpop.f32.mrb[3].mxu1 }
 0x1ce   : > { %2613 = vmatprep.subr.bf16.mxu1 %v2612_v9  ;;  %2622 = vmatpush3.bf16.msra.mxu0 %v2612_v9 }
 0x1cf   : > { %2615 = vmatpush3.bf16.msra.mxu1 %v2612_v9  ;;  %v2899_v11 = vpop.f32.mrb[4].mxu1  ;;  %2463 = vmatprep.subr.mxu0 %v2716_v7 }
 0x1d0   : > { %v2436_v12 = vpop.f32.mrb[5].mxu1  ;;  %2441 = vmatprep.subr.mxu1 %v2899_v11 }
 0x1d2   : > { %2464 = vmatpush3.msra.mxu0 %v2899_v11 }
 0x1d3   : > { %2442 = vmatpush3.msra.mxu1 %v2899_v11  ;;  %2466 = vmatmul.mubr.msk.f32.vlgmr.msra.gmra.mrb[6].mxu0 %vm751_vm2, %v2906_v13 }
 0x1d4   : > { %2444 = vmatmul.mubr.msk.f32.vlgmr.msra.gmra.mrb[6].mxu1 %vm751_vm2, %v2911_v14  ;;  %2468 = vmatprep.subr.mxu0 %v2716_v7 }
 0x1d5   : > { %2470 = vmatprep.mubr.msk.f32.mxu0 %vm2715_vm0, %v2716_v7  ;;  %2616 = vmatprep.subr.bf16.mxu1 %v2714_v4 }
 0x1d6   : > { %2450 = vmatprep.mubr.msk.f32.mxu1 %vm2715_vm0, %v2716_v7 }
 0x247   : > { %v731_v60 = vpop.permute.xlu0 %730 }
 0x248   : > { %v743_v8 = vsel %vm727_vm11, %v731_v60, 0.0 }
 0x24b   : > { %v736_v0 = vpop.permute.xlu0 %735 }
 0x24c   : > { %v744_v12 = vsel %vm727_vm11, %v736_v0, 0.0 }
 0x2a6   : > { %v1024_v15 = vpop.f32.mrb[6].mxu0 }
 0x2a7   : > { %v1028_v17 = vmul.f32 0.33333334, %v1024_v15  ;;  %v2445_v18 = vpop.f32.mrb[6].mxu1  ;;  %v2467_v19 = vpop.f32.mrb[7].mxu0 }
 0x2a8   : > { %v834_v20 = vmul.f32 0.5, %v2445_v18  ;;  %v824_v21 = vpop.f32.mrb[7].mxu1 }
 0x2a9   : > { %v833_v22 = vmul.f32 0.5, %v824_v21  ;;  %2469 = vmatpush3.msra.mxu0 %v1028_v17  ;;  %v1340_v21 = vstv %s2651_s29 }
 0x2aa   : > { %2471 = vmatmul.mubr.msk.f32.vlgmr.msra.gmra.mrb[8].mxu0 %vm1032_vm3, %v2928_v16  ;;  %2626 = vmatprep.subr.bf16.mxu0 %v2714_v4 }
 0x2ab   : > { %v2617_v24 = vpack.c.bf16 %v834_v20, %v833_v22  ;;  %2473 = vmatprep.mubr.msk.f32.mxu0 %vm2715_vm0, %v2716_v7 }
 0x2ad   : > { %2619 = vmatpush3.bf16.msk.msra.mxu1 %vm2932_vm6, %v2617_v24 }
 0x2ae   : > { %2474 = vmatmul.mubr.msk.f32.gmra.mrb[10].mxu0 %vm1032_vm3, %v2942_v25  ;;  %2623 = vmatprep.subr.bf16.mxu1 %v2714_v4 }
 0x2af   : > { %2476 = vmatprep.mubr.msk.f32.mxu0 %vm2715_vm0, %v2716_v7 }
 0x2b0   : > { %2451 = vmatmul.mubr.msk.f32.vlgmr.msra.gmra.mrb[8].mxu1 %vm838_vm7, %v2949_v26 }
 0x2b1   : > { %2625 = vmatpush3.bf16.msra.mxu1 %v2612_v9  ;;  %2453 = vmatprep.mubr.msk.f32.mxu1 %vm2715_vm0, %v2716_v7 }
 0x2b2   : > { %2483 = vmatprep.subr.mxu1 %v2716_v7  ;;  %2477 = vmatmul.mubr.msk.f32.gmra.mrb[12].mxu0 %vm1032_vm3, %v2993_v30 }
 0x2b3   : > { %2505 = vmatprep.mubr.msk.f32.mxu0 %vm2715_vm0, %v2716_v7 }
 0x2b4   : > { %2454 = vmatmul.mubr.msk.f32.gmra.mrb[10].mxu1 %vm838_vm7, %v2963_v27 }
 0x2b5   : > { %2484 = vmatpush3.msra.mxu1 %v2899_v11  ;;  %2456 = vmatprep.mubr.msk.f32.mxu1 %vm2715_vm0, %v2716_v7 }
 0x2b6   : > { %2488 = vmatprep.subr.mxu1 %v2716_v7 }
 0x2b8   : > { %2457 = vmatmul.mubr.msk.f32.gmra.mrb[12].mxu1 %vm838_vm7, %v2974_v28 }
 0x2b9   : > { %2485 = vmatprep.mubr.msk.f32.mxu1 %vm2715_vm0, %v2716_v7 }
 0x2bc   : > { %2486 = vmatmul.mubr.msk.f32.vlgmr.msra.gmra.mrb[14].mxu1 %vm751_vm2, %v2984_v29 }
 0x2bd   : > { %2490 = vmatprep.mubr.msk.f32.mxu1 %vm2715_vm0, %v2716_v7 }
 0x37d   : > { %v1108_v31 = vpop.f32.mrb[8].mxu0 }
 0x37e   : > { %v2472_v32 = vpop.f32.mrb[9].mxu0  ;;  %1125 = vperm.xlu0 %2668, %v1108_v31  }
 0x381   : > { %v1113_v33 = vpop.f32.mrb[10].mxu0 }
 0x382   : > { %1130 = vperm.xlu1 %2669, %v1113_v33   ;;  %v2475_v34 = vpop.f32.mrb[11].mxu0 }
 0x383   : > { %v918_v35 = vpop.f32.mrb[8].mxu1 }
 0x384   : > { %v2452_v36 = vpop.f32.mrb[9].mxu1 }
 0x385   : > { %v1118_v47 = vpop.f32.mrb[12].mxu0 }
 0x386   : > { %935 = vperm.xlu1 %2669, %v918_v35   ;;  %v2478_v48 = vpop.f32.mrb[13].mxu0 }
 0x387   : > { %v923_v37 = vpop.f32.mrb[10].mxu1 }
 0x388   : > { %v2455_v38 = vpop.f32.mrb[11].mxu1 }
 0x38a   : > { %940 = vperm.xlu1 %2669, %v923_v37  }
 0x38b   : > { %v928_v39 = vpop.f32.mrb[12].mxu1 }
 0x38c   : > { %v2458_v40 = vpop.f32.mrb[13].mxu1 }
 0x38f   : > { %v1214_v41 = vpop.f32.mrb[14].mxu1 }
 0x390   : > { %v1218_v42 = vmul.f32 0.25, %v1214_v41  ;;  %v2487_v43 = vpop.f32.mrb[15].mxu1 }
 0x392   : > { %2489 = vmatpush3.msk.msra.mxu1 %vm1232_vm8, %v1218_v42 }
 0x393   : > { %2491 = vmatmul.mubr.msk.f32.vlgmr.msra.gmra.mrb[16].mxu1 %vm1222_vm9, %v3002_v44  ;;  %2630 = vmatprep.subr.bf16.mxu1 %v2714_v4 }
 0x394   : > { %2493 = vmatprep.mubr.msk.f32.mxu1 %vm2715_vm0, %v2716_v7 }
 0x397   : > { %2494 = vmatmul.mubr.msk.f32.gmra.mrb[18].mxu1 %vm1222_vm9, %v3013_v45 }
 0x398   : > { %2496 = vmatprep.mubr.msk.f32.mxu1 %vm2715_vm0, %v2716_v7 }
 0x39b   : > { %2497 = vmatmul.mubr.msk.f32.gmra.mrb[20].mxu1 %vm1222_vm9, %v3022_v46 }
 0x39c   : > { %2520 = vmatprep.mubr.msk.f32.mxu1 %vm2715_vm0, %v2716_v7 }
 0x3fd   : > { %v1126_v5 = vpop.permute.xlu0 %1125 }
 0x3fe   : > { %v1138_v10 = vsel %vm1122_vm12, %v1126_v5, 0.0 }
 0x401   : > { %v1131_v57 = vpop.permute.xlu1 %1130 }
 0x402   : > { %v1139_v19 = vsel %vm1122_vm12, %v1131_v57, 0.0 }
 0x405   : > { %v936_v63 = vpop.permute.xlu1 %935 }
 0x406   : > { %v948_v2 = vsel %vm932_vm10, %v936_v63, 0.0 }
 0x407   : > { %v951_v9 = vadd.f32 %v948_v2, %v743_v8 }
 0x409   : > { %v941_v6 = vpop.permute.xlu1 %940  ;;  %v1141_v15 = vadd.f32 %v1138_v10, %v951_v9 }
 0x466   : > { %v1302_v50 = vpop.f32.mrb[16].mxu1 }
 0x467   : > { %v2492_v51 = vpop.f32.mrb[17].mxu1  ;;  %1319 = vperm.xlu0 %2668, %v1302_v50  }
 0x46a   : > { %v1307_v52 = vpop.f32.mrb[18].mxu1 }
 0x46b   : > { %v2495_v53 = vpop.f32.mrb[19].mxu1  ;;  %740 = vperm.xlu0 %2668, %v2899_v11   ;;  %1324 = vperm.xlu1 %2669, %v1307_v52   ;;  %v949_v11 = vsel %vm932_vm10, %v941_v6, 0.0 }
 0x46c   : > { %v952_v17 = vadd.f32 %v949_v11, %v744_v12 }
 0x46e   : > { %v1312_v54 = vpop.f32.mrb[20].mxu1  ;;  %v1142_v32 = vadd.f32 %v1139_v19, %v952_v17 }
 0x46f   : > { %945 = vperm.xlu1 %2669, %v928_v39   ;;  %1135 = vperm.xlu0 %2668, %v1118_v47   ;;  %v2498_v55 = vpop.f32.mrb[21].mxu1 }
 0x473   : > { %1329 = vperm.xlu1 %2669, %v1312_v54  }
 0x4e6   : > { %v1320_v18 = vpop.permute.xlu0 %1319 }
 0x4e7   : > { %v1332_v20 = vsel %vm1316_vm13, %v1320_v18, 0.0 }
 0x4e8   : > { %v1335_v22 = vadd.f32 %v1332_v20, %v1141_v15 }
 0x4ea   : > { %v1341_v24 = vadd.f32 %v1340_v21, %v1335_v22  ;;  %v741_v31 = vpop.permute.xlu0 %740  ;;  %v1325_v33 = vpop.permute.xlu1 %1324 }
 0x4eb   : > { %v1333_v34 = vsel %vm1316_vm13, %v1325_v33, 0.0  ;;  %v745_v40 = vsel %vm727_vm11, %v741_v31, 0.0 }
 0x4ec   : > { %v1336_v35 = vadd.f32 %v1333_v34, %v1142_v32  ;;  %v1345_v36 = vsel %vm1344_vm14, %v1341_v24, -inf  ;;  %v3053_v32 = vpack.c.bf16 %v2882_v62, %v2876_v59 }
 0x4ed   : > { %1346 = vmax.xlane.f32.xlu0 %v1345_v36 }
 0x4ee   : > { %v946_v37 = vpop.permute.xlu1 %945  ;;  %v1136_v38 = vpop.permute.xlu0 %1135  ;;  %v1342_v39 = vadd.f32 %v1340_v21, %v1336_v35 }
 0x4ef   : > { %v950_v41 = vsel %vm932_vm10, %v946_v37, 0.0  ;;  %v1140_v47 = vsel %vm1122_vm12, %v1136_v38, 0.0 }
 0x4f0   : > { %v953_v42 = vadd.f32 %v950_v41, %v745_v40  ;;  %v1348_v43 = vsel %vm1344_vm14, %v1342_v39, -inf }
 0x4f1   : > { %1349 = vmax.xlane.f32.xlu1 %v1348_v43 }
 0x4f2   : > { %v1143_v48 = vadd.f32 %v1140_v47, %v953_v42  ;;  %v1330_v49 = vpop.permute.xlu1 %1329 }
 0x4f3   : > { %v1334_v50 = vsel %vm1316_vm13, %v1330_v49, 0.0 }
 0x4f4   : > { %v1337_v51 = vadd.f32 %v1334_v50, %v1143_v48 }
 0x4f6   : > { %v1343_v52 = vadd.f32 %v1340_v21, %v1337_v51 }
 0x4f8   : > { %v1351_v53 = vsel %vm1344_vm14, %v1343_v52, -inf }
 0x4f9   : > { %1352 = vmax.xlane.f32.xlu0 %v1351_v53 }
 0x57a   : > { %v1347_v54 = vpop.xlane.xlu0 %1346 }
 0x57b   : > { %v1354_v55 = vsub.f32 %v1341_v24, %v1347_v54 }
 0x57d   : > { %v1357_v57 = vmul.f32 1.442695, %v1354_v55 }
 0x57e   : > { %v1350_v58 = vpop.xlane.xlu1 %1349 }
 0x57f   : > { %2682 = vpow2.f32 %v1357_v57  ;;  %v1355_v60 = vsub.f32 %v1342_v39, %v1350_v58 }
 0x581   : > { %v1359_v63 = vmul.f32 1.442695, %v1355_v60  ;;  %v2719_v60 = vmov 2  }
 0x582   : > { %2671 = vset.pattern.permute.xlu0 %v2719_v60 }
 0x583   : > { %2684 = vpow2.f32 %v1359_v63 }
 0x586   : > { %v1353_v0 = vpop.xlane.xlu0 %1352 }
 0x587   : > { %v1356_v2 = vsub.f32 %v1343_v52, %v1353_v0 }
 0x589   : > { %v2683_v5 = vpop.eup %2682  ;;  %v1361_v6 = vmul.f32 1.442695, %v1356_v2 }
 0x58a   : > { %v1363_v61 = vsel %vm1344_vm14, %v2683_v5, 0.0 }
 0x58b   : > { %2686 = vpow2.f32 %v1361_v6  ;;  %1364 = vadd.xlane.f32.xlu0 %v1363_v61 }
 0x58d   : > { %v2685_v8 = vpop.eup %2684 }
 0x58e   : > { %v1366_v9 = vsel %vm1344_vm14, %v2685_v8, 0.0 }
 0x58f   : > { %1367 = vadd.xlane.f32.xlu1 %v1366_v9 }
 0x595   : > { %v2687_v10 = vpop.eup %2686 }
 0x596   : > { %v1369_v11 = vsel %vm1344_vm14, %v2687_v10, 0.0 }
 0x597   : > { %1370 = vadd.xlane.f32.xlu0 %v1369_v11 }
 0x618   : > { %v1365_v12 = vpop.xlane.xlu0 %1364 }
 0x619   : > { %2688 = vrcp.f32 %v1365_v12 }
 0x61c   : > { %v1368_v15 = vpop.xlane.xlu1 %1367 }
 0x61d   : > { %2690 = vrcp.f32 %v1368_v15 }
 0x623   : > { %v2689_v18 = vpop.eup %2688 }
 0x624   : > { %v1371_v17 = vpop.xlane.xlu0 %1370  ;;  %v1375_v20 = vmul.f32 %v2689_v18, %v2683_v5 }
 0x625   : > { %2692 = vrcp.f32 %v1371_v17 }
 0x627   : > { %v2691_v19 = vpop.eup %2690 }
 0x628   : > { %v1376_v21 = vmul.f32 %v2691_v19, %v2685_v8 }
 0x62a   : > { %v2627_v22 = vpack.c.bf16 %v1376_v21, %v1375_v20 }
 0x62c   : > { %2629 = vmatpush3.bf16.xpose.msk.msra.mxu0 %vm2628_vm15, %v2627_v22  ;;  %2632 = vmatpush3.bf16.msra.mxu1 %v2627_v22 }
 0x62d   : > { %2518 = vmatprep.subr.mxu1 %v2716_v7  ;;  %2503 = vmatprep.subr.mxu0 %v2716_v7 }
 0x62f   : > { %v2693_v24 = vpop.eup %2692 }
 0x630   : > { %v1377_v31 = vmul.f32 %v2693_v24, %v2687_v10  ;;  %v2720_v24 = vmov 1  }
 0x632   : > { %2519 = vmatpush3.msra.mxu1 %v1377_v31 }
 0x633   : > { %2641 = vmatprep.subr.bf16.mxu1 %v2714_v4 }
 0x634   : > { %2504 = vmatpush3.xpose.msk.msra.mxu0 %vm1344_vm14, %v1377_v31 }
 0x635   : > { %2634 = vmatprep.subr.bf16.mxu0 %v3053_v32 }
 0x637   : > { %2506 = vmatmul.mubr.msk.f32.vlgmr.msra.gmra.mrb[14].mxu0 %vm1344_vm14, %v1375_v20 }
 0x638   : > { %2636 = vmatpush3.bf16.msra.mxu0 %v3053_v32  ;;  %2508 = vmatprep.mubr.msk.f32.mxu0 %vm2715_vm0, %v2716_v7 }
 0x639   : > { %2533 = vmatprep.subr.mxu0 %v2888_v1 }
 0x63b   : > { %2509 = vmatmul.mubr.msk.f32.gmra.mrb[16].mxu0 %vm1344_vm14, %v1376_v21 }
 0x63c   : > { %2534 = vmatpush3.msra.mxu0 %v2888_v1  ;;  %2511 = vmatprep.mubr.msk.f32.mxu0 %vm2715_vm0, %v2716_v7 }
 0x63d   : > { %2637 = vmatprep.subr.bf16.mxu0 %v2714_v4 }
 0x63f   : > { %2512 = vmatmul.mubr.msk.f32.gmra.mrb[18].mxu0 %vm1344_vm14, %v1377_v31 }
 0x640   : > { %2535 = vmatprep.mubr.msk.f32.mxu0 %vm751_vm2, %v2895_v3 }
 0x643   : > { %2536 = vmatmul.mubr.msk.f32.vlgmr.msra.gmra.mrb[20].mxu0 %vm751_vm2, %v2911_v14 }
 0x644   : > { %2542 = vmatprep.mubr.msk.f32.mxu0 %vm2715_vm0, %v2716_v7 }
 0x70a   : > { %v1453_v33 = vpop.f32.mrb[14].mxu0 }
 0x70b   : > { %v2507_v34 = vpop.f32.mrb[15].mxu0  ;;  %v1467_v35 = vsel %vm751_vm2, %v1453_v33, -inf }
 0x70c   : > { %1468 = vmax.xlane.f32.xlu1 %v1467_v35 }
 0x70e   : > { %v1458_v36 = vpop.f32.mrb[16].mxu0 }
 0x70f   : > { %v2510_v37 = vpop.f32.mrb[17].mxu0  ;;  %v1470_v38 = vsel %vm751_vm2, %v1458_v36, -inf }
 0x710   : > { %1471 = vmax.xlane.f32.xlu0 %v1470_v38 }
 0x712   : > { %v1463_v39 = vpop.f32.mrb[18].mxu0 }
 0x713   : > { %v2513_v40 = vpop.f32.mrb[19].mxu0  ;;  %v1473_v3 = vsel %vm751_vm2, %v1463_v39, -inf }
 0x714   : > { %1474 = vmax.xlane.f32.xlu1 %v1473_v3 }
 0x716   : > { %v2537_v41 = vpop.f32.mrb[20].mxu0 }
 0x717   : > { %v1686_v14 = vmul.f32 0.5, %v2537_v41  ;;  %v1676_v42 = vpop.f32.mrb[21].mxu0 }
 0x718   : > { %v1685_v43 = vmul.f32 0.5, %v1676_v42 }
 0x71a   : > { %v2638_v47 = vpack.c.bf16 %v1686_v14, %v1685_v43 }
 0x71c   : > { %2640 = vmatpush3.bf16.msk.msra.mxu0 %vm2932_vm6, %v2638_v47 }
 0x71d   : > { %2644 = vmatprep.subr.bf16.mxu0 %v2714_v4 }
 0x71f   : > { %2543 = vmatmul.mubr.msk.f32.vlgmr.msra.gmra.mrb[22].mxu0 %vm838_vm7, %v2949_v26 }
 0x720   : > { %2646 = vmatpush3.bf16.msra.mxu0 %v3053_v32  ;;  %2545 = vmatprep.mubr.msk.f32.mxu0 %vm2715_vm0, %v2716_v7 }
 0x721   : > { %2575 = vmatprep.subr.mxu0 %v2716_v7 }
 0x723   : > { %2546 = vmatmul.mubr.msk.f32.gmra.mrb[24].mxu0 %vm838_vm7, %v2963_v27 }
 0x724   : > { %2576 = vmatpush3.msra.mxu0 %v2888_v1  ;;  %2548 = vmatprep.mubr.msk.f32.mxu0 %vm2715_vm0, %v2716_v7 }
 0x725   : > { %2580 = vmatprep.subr.mxu0 %v2716_v7 }
 0x727   : > { %2549 = vmatmul.mubr.msk.f32.gmra.mrb[26].mxu0 %vm838_vm7, %v2974_v28 }
 0x728   : > { %2577 = vmatprep.mubr.msk.f32.mxu0 %vm2715_vm0, %v2716_v7 }
 0x72b   : > { %2578 = vmatmul.mubr.msk.f32.vlgmr.msra.gmra.mrb[28].mxu0 %vm751_vm2, %v2984_v29 }
 0x72c   : > { %2582 = vmatprep.mubr.msk.f32.mxu0 %vm2715_vm0, %v2716_v7 }
 0x799   : > { %v1469_v23 = vpop.xlane.xlu1 %1468 }
 0x79a   : > { %v1476_v26 = vsub.f32 %v1453_v33, %v1469_v23 }
 0x79c   : > { %v1479_v27 = vmul.f32 1.442695, %v1476_v26 }
 0x79d   : > { %v1472_v48 = vpop.xlane.xlu0 %1471 }
 0x79e   : > { %2694 = vpow2.f32 %v1479_v27  ;;  %v1477_v49 = vsub.f32 %v1458_v36, %v1472_v48 }
 0x7a0   : > { %v1481_v50 = vmul.f32 1.442695, %v1477_v49 }
 0x7a1   : > { %v1475_v51 = vpop.xlane.xlu1 %1474 }
 0x7a2   : > { %2696 = vpow2.f32 %v1481_v50  ;;  %v1478_v52 = vsub.f32 %v1463_v39, %v1475_v51 }
 0x7a4   : > { %v1483_v28 = vmul.f32 1.442695, %v1478_v52 }
 0x7a6   : > { %2698 = vpow2.f32 %v1483_v28 }
 0x7a8   : > { %v2695_v53 = vpop.eup %2694 }
 0x7a9   : > { %v1485_v54 = vsel %vm751_vm2, %v2695_v53, 0.0 }
 0x7aa   : > { %1486 = vadd.xlane.f32.xlu0 %v1485_v54 }
 0x7ac   : > { %v2697_v29 = vpop.eup %2696 }
 0x7ad   : > { %v1488_v55 = vsel %vm751_vm2, %v2697_v29, 0.0 }
 0x7ae   : > { %1489 = vadd.xlane.f32.xlu1 %v1488_v55 }
 0x7b0   : > { %v2699_v57 = vpop.eup %2698 }
 0x7b1   : > { %v1491_v58 = vsel %vm751_vm2, %v2699_v57, 0.0 }
 0x7b2   : > { %1492 = vadd.xlane.f32.xlu0 %v1491_v58 }
 0x7f2   : > { %v3105_v63 = vpop.f32.mrb[22].mxu0 }
 0x7f3   : > { %v2544_v0 = vpop.f32.mrb[23].mxu0 }
 0x7f6   : > { %v3107_v2 = vpop.f32.mrb[24].mxu0 }
 0x7f7   : > { %v2547_v5 = vpop.f32.mrb[25].mxu0 }
 0x7fa   : > { %v3109_v6 = vpop.f32.mrb[26].mxu0 }
 0x7fb   : > { %v2550_v61 = vpop.f32.mrb[27].mxu0 }
 0x7fe   : > { %v2023_v8 = vpop.f32.mrb[28].mxu0 }
 0x7ff   : > { %v2027_v9 = vmul.f32 0.25, %v2023_v8  ;;  %v2579_v10 = vpop.f32.mrb[29].mxu0 }
 0x801   : > { %2581 = vmatpush3.msk.msra.mxu0 %vm1232_vm8, %v2027_v9 }
 0x802   : > { %2583 = vmatmul.mubr.msk.f32.vlgmr.msra.gmra.mrb[30].mxu0 %vm1222_vm9, %v3002_v44 }
 0x803   : > { %2585 = vmatprep.mubr.msk.f32.mxu0 %vm2715_vm0, %v2716_v7 }
 0x806   : > { %2586 = vmatmul.mubr.msk.f32.gmra.mrb[32].mxu0 %vm1222_vm9, %v3013_v45 }
 0x807   : > { %2588 = vmatprep.mubr.msk.f32.mxu0 %vm2715_vm0, %v2716_v7 }
 0x80a   : > { %2589 = vmatmul.mubr.msk.f32.gmra.mrb[34].mxu0 %vm1222_vm9, %v3022_v46 }
 0x837   : > { %v1487_v11 = vpop.xlane.xlu0 %1486 }
 0x838   : > { %2700 = vrcp.f32 %v1487_v11 }
 0x83b   : > { %v1490_v12 = vpop.xlane.xlu1 %1489 }
 0x83c   : > { %2702 = vrcp.f32 %v1490_v12 }
 0x83f   : > { %v1493_v15 = vpop.xlane.xlu0 %1492 }
 0x840   : > { %2704 = vrcp.f32 %v1493_v15 }
 0x842   : > { %v2701_v17 = vpop.eup %2700 }
 0x843   : > { %v1497_v44 = vmul.f32 %v2701_v17, %v2695_v53 }
 0x845   : > { %2521 = vmatmul.mubr.msk.f32.vlgmr.msra.gmra.mrb[22].mxu1 %vm751_vm2, %v1497_v44 }
 0x846   : > { %v2703_v18 = vpop.eup %2702  ;;  %2643 = vmatpush3.bf16.msra.mxu1 %v3053_v32  ;;  %2523 = vmatprep.mubr.msk.f32.mxu1 %vm2715_vm0, %v2716_v7 }
 0x847   : > { %2555 = vmatprep.subr.mxu1 %v2716_v7  ;;  %v1498_v45 = vmul.f32 %v2703_v18, %v2697_v29 }
 0x849   : > { %2524 = vmatmul.mubr.msk.f32.gmra.mrb[24].mxu1 %vm751_vm2, %v1498_v45 }
 0x84a   : > { %v2705_v46 = vpop.eup %2704  ;;  %2556 = vmatpush3.msra.mxu1 %v2888_v1  ;;  %2526 = vmatprep.mubr.msk.f32.mxu1 %vm2715_vm0, %v2716_v7 }
 0x84b   : > { %v1499_v19 = vmul.f32 %v2705_v46, %v2699_v57  ;;  %2560 = vmatprep.subr.mxu1 %v2716_v7 }
 0x84d   : > { %2527 = vmatmul.mubr.msk.f32.gmra.mrb[26].mxu1 %vm751_vm2, %v1499_v19 }
 0x84e   : > { %2557 = vmatprep.mubr.msk.f32.mxu1 %vm2715_vm0, %v2716_v7 }
 0x851   : > { %2558 = vmatmul.mubr.msk.f32.vlgmr.msra.gmra.mrb[28].mxu1 %vm751_vm2, %v2906_v13  ;;  %v2721_v13 = vmov 3  }
 0x852   : > { %2562 = vmatprep.mubr.msk.f32.mxu1 %vm2715_vm0, %v2716_v7 }
 0x8d5   : > { %v2097_v33 = vpop.f32.mrb[30].mxu0 }
 0x8d6   : > { %v2584_v35 = vpop.f32.mrb[31].mxu0 }
 0x8d9   : > { %v2102_v36 = vpop.f32.mrb[32].mxu0 }
 0x8da   : > { %v2587_v38 = vpop.f32.mrb[33].mxu0 }
 0x918   : > { %v1575_v20 = vpop.f32.mrb[22].mxu1 }
 0x919   : > { %v2522_v21 = vpop.f32.mrb[23].mxu1  ;;  %1591 = vperm.xlu1 %2669, %v1575_v20   ;;  %1940 = vperm.xlu0 %2671, %v1575_v20  }
 0x91c   : > { %v1580_v22 = vpop.f32.mrb[24].mxu1 }
 0x91d   : > { %2670 = vset.pattern.permute.xlu1 %v2720_v24  ;;  %2673 = vset.pattern.permute.xlu0 %v2717_v56  ;;  %v2525_v31 = vpop.f32.mrb[25].mxu1 }
 0x91e   : > { %1771 = vperm.xlu1 %2670, %v1575_v20   ;;  %1596 = vperm.xlu0 %2673, %v1580_v22  }
 0x920   : > { %v1585_v32 = vpop.f32.mrb[26].mxu1 }
 0x921   : > { %v2528_v34 = vpop.f32.mrb[27].mxu1 }
 0x922   : > { %2672 = vset.pattern.permute.xlu1 %v2721_v13  ;;  %2676 = vset.pattern.permute.xlu0 %v2721_v13 }
 0x923   : > { %2112 = vperm.xlu1 %2672, %v1575_v20   ;;  %2116 = vperm.xlu0 %2676, %v1580_v22  }
 0x924   : > { %v1854_v37 = vpop.f32.mrb[28].mxu1 }
 0x925   : > { %v1858_v39 = vmul.f32 0.33333334, %v1854_v37  ;;  %v2559_v40 = vpop.f32.mrb[29].mxu1 }
 0x927   : > { %2674 = vset.pattern.permute.xlu1 %v2720_v24  ;;  %2679 = vset.pattern.permute.xlu0 %v2719_v60 }
 0x928   : > { %2561 = vmatpush3.msra.mxu1 %v1858_v39  ;;  %1775 = vperm.xlu1 %2674, %v1580_v22  }
 0x929   : > { %1948 = vperm.xlu0 %2679, %v1585_v32   ;;  %2563 = vmatmul.mubr.msk.f32.vlgmr.msra.gmra.mrb[30].mxu1 %vm1032_vm3, %v2928_v16 }
 0x92a   : > { %2565 = vmatprep.mubr.msk.f32.mxu1 %vm2715_vm0, %v2716_v7  ;;  %2647 = vmatprep.subr.bf16.mxu1 %v2714_v4  ;;  %v2107_v4 = vpop.f32.mrb[34].mxu0 }
 0x92b   : > { %v2590_v16 = vpop.f32.mrb[35].mxu0 }
 0x92c   : > { %2675 = vset.pattern.permute.xlu1 %v2719_v60 }
 0x92d   : > { %2566 = vmatmul.mubr.msk.f32.gmra.mrb[32].mxu1 %vm1032_vm3, %v2942_v25  ;;  %1944 = vperm.xlu1 %2675, %v1580_v22  }
 0x92e   : > { %2568 = vmatprep.mubr.msk.f32.mxu1 %vm2715_vm0, %v2716_v7  ;;  %2681 = vset.pattern.permute.xlu0 %v2721_v13 }
 0x931   : > { %2569 = vmatmul.mubr.msk.f32.gmra.mrb[34].mxu1 %vm1032_vm3, %v2993_v30  ;;  %2677 = vset.pattern.permute.xlu1 %v2717_v56 }
 0x932   : > { %1601 = vperm.xlu1 %2677, %v1585_v32   ;;  %2597 = vmatprep.mubr.msk.f32.mxu1 %vm2715_vm0, %v2716_v7  ;;  %vm2203_vm0 = vcmask 259072  }
 0x936   : > { %2678 = vset.pattern.permute.xlu1 %v2720_v24 }
 0x937   : > { %1779 = vperm.xlu1 %2678, %v1585_v32  }
 0x93b   : > { %2680 = vset.pattern.permute.xlu1 %v2721_v13 }
 0x93c   : > { %2120 = vperm.xlu1 %2680, %v1585_v32  }
 0x998   : > { %v1592_v25 = vpop.permute.xlu1 %1591  ;;  %v1941_v42 = vpop.permute.xlu0 %1940 }
 0x999   : > { %v1604_v23 = vmul.f32 %v1592_v25, %v2876_v59 }
 0x99d   : > { %v1772_v3 = vpop.permute.xlu1 %1771  ;;  %v1597_v47 = vpop.permute.xlu0 %1596 }
 0x99e   : > { %v1782_v56 = vmul.f32 %v1772_v3, %v3105_v63  ;;  %v1605_v28 = vmul.f32 %v1597_v47, %v2882_v62 }
 0x9a0   : > { %v1785_v27 = vadd.f32 %v1782_v56, %v1604_v23 }
 0x9a2   : > { %v2113_v41 = vpop.permute.xlu1 %2112  ;;  %v2117_v48 = vpop.permute.xlu0 %2116 }
 0x9a3   : > { %v2123_v53 = vmul.f32 %v2113_v41, %v2097_v33  ;;  %v2124_v59 = vmul.f32 %v2117_v48, %v2102_v36 }
 0x9a7   : > { %v1776_v14 = vpop.permute.xlu1 %1775 }
 0x9a8   : > { %v1783_v49 = vmul.f32 %v1776_v14, %v3107_v2  ;;  %v1949_v0 = vpop.permute.xlu0 %1948 }
 0x9aa   : > { %v1786_v55 = vadd.f32 %v1783_v49, %v1605_v28 }
 0x9ac   : > { %v1945_v43 = vpop.permute.xlu1 %1944 }
 0x9b1   : > { %v1602_v30 = vpop.permute.xlu1 %1601 }
 0x9b2   : > { %v1606_v5 = vmul.f32 %v1602_v30, %v2888_v1 }
 0x9b6   : > { %v1780_v52 = vpop.permute.xlu1 %1779 }
 0x9b7   : > { %v1784_v57 = vmul.f32 %v1780_v52, %v3109_v6  ;;  %v2129_v6 = vld [vmem:[%s3181_s7] sm:$0x3f] }
 0x9b9   : > { %v1787_v9 = vadd.f32 %v1784_v57, %v1606_v5 }
 0x9bb   : > { %v2121_v2 = vpop.permute.xlu1 %2120 }
 0x9bc   : > { %v2125_v12 = vmul.f32 %v2121_v2, %v2107_v4 }
 0x9fc   : > { %v1925_v26 = vpop.f32.mrb[30].mxu1 }
 0x9fd   : > { %v1951_v50 = vmul.f32 %v1941_v42, %v1925_v26  ;;  %v2564_v51 = vpop.f32.mrb[31].mxu1 }
 0x9ff   : > { %v1954_v54 = vadd.f32 %v1951_v50, %v1785_v27 }
 0xa00   : > { %v1930_v29 = vpop.f32.mrb[32].mxu1 }
 0xa01   : > { %v2126_v58 = vadd.f32 %v2123_v53, %v1954_v54  ;;  %v1952_v60 = vmul.f32 %v1945_v43, %v1930_v29  ;;  %v2567_v63 = vpop.f32.mrb[33].mxu1 }
 0xa03   : > { %v1955_v61 = vadd.f32 %v1952_v60, %v1786_v55 }
 0xa04   : > { %v1935_v8 = vpop.f32.mrb[34].mxu1 }
 0xa05   : > { %v2127_v10 = vadd.f32 %v2124_v59, %v1955_v61  ;;  %v1953_v62 = vmul.f32 %v1949_v0, %v1935_v8  ;;  %v2570_v11 = vpop.f32.mrb[35].mxu1 }
 0xa07   : > { %v2648_v15 = vpack.c.bf16 %v2127_v10, %v2126_v58  ;;  %v1956_v17 = vadd.f32 %v1953_v62, %v1787_v9 }
 0xa09   : > { %v2128_v44 = vadd.f32 %v2125_v12, %v1956_v17  ;;  %2649 = vmatpush3.bf16.msra.mxu1 %v2648_v15 }
 0xa0a   : > { %2595 = vmatprep.subr.mxu1 %v2716_v7 }
 0xa0d   : > { %2596 = vmatpush3.msra.mxu1 %v2128_v44 }
 0xa0e   : > { %2598 = vmatmul.mubr.msk.f32.vlgmr.msra.gmra.mrb[36].mxu1 %vm751_vm2, %v2129_v6 }
 0xae1   : > { %v2199_v1 = vpop.f32.mrb[36].mxu1 }
 0xae2   : > { %2204 = vst.msk [vmem:[%s467_s20] sm:$0x3f] %vm2203_vm0, %v2199_v1  ;;  %v2599_v18 = vpop.f32.mrb[37].mxu1 }
 0xae3 PF: > { %s26_s15 = sadd.s32 1, %s2712_s15  }
 0xae4   : > { %p23_p4 = scmp.ge.s32.totalorder %s26_s15, 4  }
 0xae6   :  { %25 = sbr.rel (!%p23_p4) target bundleno = 3 (0x3), region = 106 }

</bundles_post_ra>
